<compile_context>
chip_gen: v7x
topology: tpu7x:2x2x1
jax: 0.10.0
libtpu: 0.0.40
codegen_flags: <defaults>
</compile_context>

<pallas_src>
import functools

import jax
import jax.numpy as jnp
from jax.experimental import pallas as pl
from jax.experimental.pallas import tpu as pltpu


def _channel_attention_kernel(x_ref, w1t_ref, w2t_ref, o_ref, acc_ref, *, inv_hw):
    # x_ref  : (n_tile, C, d_tile, hw_tile)  activation slab (native layout)
    # w1t_ref: (C, Cr)   fc1 weight, pre-transposed in the wrapper
    # w2t_ref: (Cr, C)   fc2 weight, pre-transposed in the wrapper
    # o_ref  : (n_tile, d_tile, C)   sigmoid attention map (lane-dense in C)
    # acc_ref: (n_tile, C, d_tile) f32  running pooling sum across HW tiles
    hw_step = pl.program_id(2)

    @pl.when(hw_step == 0)
    def _():
        acc_ref[...] = jnp.zeros_like(acc_ref)

    # Partial sum over this HW tile; accumulate in f32 and divide once at the
    # end so numerics match a single jnp.mean over the full H*W extent.
    acc_ref[...] += jnp.sum(x_ref[...].astype(jnp.float32), axis=-1)

    @pl.when(hw_step == pl.num_programs(2) - 1)
    def _():
        n_tile, C, d_tile = acc_ref.shape
        pooled = acc_ref[...] * inv_hw                          # (n, C, d)
        pooled_t = jnp.transpose(pooled, (0, 2, 1))             # (n, d, C)
        p2 = pooled_t.reshape(n_tile * d_tile, C)               # lane-dense rows
        h = jnp.dot(p2, w1t_ref[...], preferred_element_type=jnp.float32)
        h = jnp.maximum(h, 0.0)                                 # (n*d, Cr)
        branch = jnp.dot(h, w2t_ref[...], preferred_element_type=jnp.float32)
        # avg_out + max_out: both pools are avg pools in the source module,
        # so the two branches are identical -> 2 * branch.
        att = jax.nn.sigmoid(2.0 * branch)                      # (n*d, C)
        o_ref[...] = att.reshape(n_tile, d_tile, C).astype(o_ref.dtype)


def _vmem_budget():
    """Derive (target_block_bytes, vmem_limit_bytes) from the chip's VMEM."""
    vmem_phys = 64 * 1024 * 1024          # conservative default (v7x per-core)
    try:
        info = pltpu.get_tpu_info()
        for attr in ("vmem_capacity_bytes", "vmem_size_bytes", "vmem_bytes"):
            v = getattr(info, attr, None)
            if v:
                vmem_phys = int(v)
                break
    except Exception:
        pass
    # Half the physical VMEM as scoped limit (>=32 MiB so v5e's 16 MiB default
    # scoped limit is always raised), capped at 64 MiB.
    vmem_limit = min(max(vmem_phys // 2, 32 * 1024 * 1024), 64 * 1024 * 1024)
    # Double-buffered x block (2x) + acc/weights/out must fit under the limit.
    # => ~limit/3 per block: ~10-11 MiB on v7x (64 MiB VMEM), 20 MiB on v5e/v6e.
    target_block = min(max(vmem_limit // 3, 4 * 1024 * 1024), 20 * 1024 * 1024)
    return target_block, vmem_limit


def _choose_tiles(N, C, D, HW, itemsize, target):
    """Pick (n_tile, d_tile, hw_tile) so the x block fits `target` bytes.

    Preference: batch N when one sample fits; else tile D (contiguous DMAs,
    no divisibility headaches); only tile HW (strided DMAs) as a last resort.
    All tiles divide their axis exactly so no masking is needed; d_tile
    respects sublane packing (8 for f32, 16 for bf16) and hw_tile the 128-lane
    rule.
    """
    slab = C * D * HW * itemsize                      # one batch element
    if slab <= target:
        n_tile = int(max(1, min(N, target // slab)))
        while N % n_tile:
            n_tile -= 1
        return n_tile, D, HW

    d_step = max(8, 32 // itemsize)                   # sublane packing step
    d_tile = D
    if D % d_step == 0 and D > d_step:
        row = C * HW * itemsize                       # bytes per unit of D
        cap = int(min(max(target // row, d_step), D))
        d_tile = (cap // d_step) * d_step
        while d_tile > d_step and D % d_tile:
            d_tile -= d_step
        if D % d_tile:
            d_tile = d_step

    if C * d_tile * HW * itemsize <= target:
        return 1, int(d_tile), HW

    # Last resort: also tile HW with a 128-multiple divisor (strided DMAs).
    hw_row = C * d_tile * itemsize
    cap = int(min(max(target // hw_row, 128), HW))
    hw_tile = (cap // 128) * 128
    while hw_tile > 128 and HW % hw_tile:
        hw_tile -= 128
    if hw_tile >= 128 and HW % hw_tile == 0:
        return 1, int(d_tile), int(hw_tile)
    # TODO(synk): no clean divisor-based tiling found; fall back to a full-HW
    # slab (correct, may exceed the target); masked partial tiles would be the
    # next refinement.
    return 1, int(d_tile), HW


def channel_attention(x, w1, w2, *, target_block_bytes=None, vmem_limit_bytes=None):
    """x: (N, C, D, H, W); w1: (C//16, C, 1, 1, 1); w2: (C, C//16, 1, 1, 1).

    Returns the sigmoid channel-attention map of shape (N, C, D, 1, 1) in
    x.dtype, matching the PyTorch module's output.
    """
    N, C, D, H, W = x.shape
    Cr = w1.shape[0]
    HW = H * W

    auto_target, auto_limit = _vmem_budget()
    if target_block_bytes is None:
        target_block_bytes = auto_target
    if vmem_limit_bytes is None:
        vmem_limit_bytes = auto_limit

    # Free, contiguous reshape of x; weights are tiny, pre-transpose on host.
    x_k = x.reshape(N, C, D, HW)
    w1t = w1.reshape(Cr, C).T.astype(jnp.float32)     # (C, Cr)
    w2t = w2.reshape(C, Cr).T.astype(jnp.float32)     # (Cr, C)

    itemsize = jnp.dtype(x.dtype).itemsize
    n_tile, d_tile, hw_tile = _choose_tiles(N, C, D, HW, itemsize, target_block_bytes)
    grid = (N // n_tile, D // d_tile, HW // hw_tile)

    out_ndc = pl.pallas_call(
        functools.partial(_channel_attention_kernel, inv_hw=1.0 / HW),
        out_shape=jax.ShapeDtypeStruct((N, D, C), x.dtype),
        grid_spec=pltpu.PrefetchScalarGridSpec(
            num_scalar_prefetch=0,
            grid=grid,
            in_specs=[
                pl.BlockSpec((n_tile, C, d_tile, hw_tile),
                             lambda i, j, k: (i, 0, j, k)),
                pl.BlockSpec((C, Cr), lambda i, j, k: (0, 0)),
                pl.BlockSpec((Cr, C), lambda i, j, k: (0, 0)),
            ],
            out_specs=pl.BlockSpec((n_tile, d_tile, C),
                                   lambda i, j, k: (i, j, 0)),
            scratch_shapes=[pltpu.VMEM((n_tile, C, d_tile), jnp.float32)],
        ),
        compiler_params=pltpu.CompilerParams(
            dimension_semantics=("parallel", "parallel", "arbitrary"),
            vmem_limit_bytes=vmem_limit_bytes,
        ),
    )(x_k, w1t, w2t)

    # Tiny output: (N, D, C) -> (N, C, D, 1, 1).
    return jnp.transpose(out_ndc, (0, 2, 1))[..., None, None]


def _reference(x, w1, w2):
    """Plain-JAX reference of the PyTorch forward (for validation)."""
    C = x.shape[1]
    Cr = w1.shape[0]
    w1m = w1.reshape(Cr, C)
    w2m = w2.reshape(C, Cr)
    pooled = jnp.mean(x.astype(jnp.float32), axis=(3, 4))      # (N, C, D)
    h = jnp.maximum(jnp.einsum("ncd,rc->nrd", pooled, w1m), 0.0)
    branch = jnp.einsum("nrd,cr->ncd", h, w2m)                 # (N, C, D)
    return jax.nn.sigmoid(branch + branch)[..., None, None]


if __name__ == "__main__":
    key = jax.random.PRNGKey(0)
    k_x, k_w1, k_w2 = jax.random.split(key, 3)

    N, C, D, H, W = 2, 32, 8, 16, 16        # in_planes=32 -> hidden = 32 // 16 = 2
    Cr = C // 16

    x = jax.random.normal(k_x, (N, C, D, H, W), dtype=jnp.float32)

    # Deterministic Conv3d-style weights, bias=False.
    b1 = 1.0 / jnp.sqrt(jnp.float32(C))
    b2 = 1.0 / jnp.sqrt(jnp.float32(Cr))
    w1 = jax.random.uniform(k_w1, (Cr, C, 1, 1, 1), jnp.float32, -b1, b1)
    w2 = jax.random.uniform(k_w2, (C, Cr, 1, 1, 1), jnp.float32, -b2, b2)

    ref = _reference(x, w1, w2)

    # Path 1: auto tiles (per-sample slab fits -> N is batched into one block).
    out = jax.block_until_ready(channel_attention(x, w1, w2))
    assert out.shape == (N, C, D, 1, 1), out.shape
    assert jnp.allclose(out, ref, atol=1e-5, rtol=1e-5), "mismatch (auto)"

    # Path 2: force HW-reduction tiling (exercises accumulator + finalize).
    out_hw = jax.block_until_ready(
        channel_attention(x, w1, w2, target_block_bytes=128 * 1024))
    assert jnp.allclose(out_hw, ref, atol=1e-5, rtol=1e-5), "mismatch (hw-tiled)"

    # Path 3: force D tiling (preferred contiguous-DMA path, parallel D axis).
    x2 = jax.random.normal(k_x, (1, C, 16, H, W), dtype=jnp.float32)
    ref2 = _reference(x2, w1, w2)
    out_d = jax.block_until_ready(
        channel_attention(x2, w1, w2, target_block_bytes=256 * 1024))
    assert out_d.shape == (1, C, 16, 1, 1), out_d.shape
    assert jnp.allclose(out_d, ref2, atol=1e-5, rtol=1e-5), "mismatch (d-tiled)"

    # Path 4: bf16 activations (halves streamed HBM bytes; f32 accumulator).
    x_bf = x.astype(jnp.bfloat16)
    ref_bf = _reference(x_bf, w1, w2)
    out_bf = jax.block_until_ready(channel_attention(x_bf, w1, w2))
    assert out_bf.dtype == jnp.bfloat16
    assert jnp.allclose(out_bf.astype(jnp.float32), ref_bf, atol=1e-2), "mismatch (bf16)"

    print("KERNEL_OK")
</pallas_src>

<mosaic_0001>
module attributes {stable_mosaic.version = 11 : i64} {
  func.func @_channel_attention_kernel(%arg0: i32, %arg1: i32, %arg2: i32, %arg3: memref<2x32x8x256xf32, #tpu.memory_space<vmem>>, %arg4: memref<32x2xf32, #tpu.memory_space<vmem>>, %arg5: memref<2x32xf32, #tpu.memory_space<vmem>>, %arg6: memref<2x8x32xf32, #tpu.memory_space<vmem>>, %arg7: memref<2x32x8xf32, #tpu.memory_space<vmem>>) attributes {dimension_semantics = [#tpu.dimension_semantics<parallel>, #tpu.dimension_semantics<parallel>, #tpu.dimension_semantics<arbitrary>], iteration_bounds = array<i64: 1, 1, 1>, scalar_prefetch = 0 : i64, scratch_operands = 1 : i64, tpu.core_type = #tpu.core_type<tc>, window_params = [{transform_indices = @transform_0, window_bounds = array<i64: 2, 32, 8, 256>}, {pipeline_mode = #tpu.pipeline_mode<synchronous>, transform_indices = @transform_1, window_bounds = array<i64: 32, 2>}, {pipeline_mode = #tpu.pipeline_mode<synchronous>, transform_indices = @transform_2, window_bounds = array<i64: 2, 32>}, {transform_indices = @transform_3, window_bounds = array<i64: 2, 8, 32>}]} {
    %c0_i32 = arith.constant 0 : i32
    %0 = arith.cmpi eq, %arg2, %c0_i32 : i32
    %1 = arith.extui %0 : i1 to i32
    %c0_i32_0 = arith.constant 0 : i32
    %2 = arith.cmpi ne, %1, %c0_i32_0 : i32
    scf.if %2 {
      %cst_12 = arith.constant 0.000000e+00 : f32
      %11 = vector.broadcast %cst_12 : f32 to vector<2x32x8xf32>
      %c0_13 = arith.constant 0 : index
      %c0_14 = arith.constant 0 : index
      %c0_15 = arith.constant 0 : index
      %12 = vector.load %arg7[%c0_13, %c0_14, %c0_15] : memref<2x32x8xf32, #tpu.memory_space<vmem>>, vector<2x32x8xf32>
      tpu.vector_store %arg7[%c0_13, %c0_14, %c0_15], %11 {strides = array<i32>} : memref<2x32x8xf32, #tpu.memory_space<vmem>>, vector<2x32x8xf32>,
    } else {
    }
    %c0 = arith.constant 0 : index
    %c0_1 = arith.constant 0 : index
    %c0_2 = arith.constant 0 : index
    %3 = vector.load %arg7[%c0, %c0_1, %c0_2] : memref<2x32x8xf32, #tpu.memory_space<vmem>>, vector<2x32x8xf32>
    %c0_3 = arith.constant 0 : index
    %c0_4 = arith.constant 0 : index
    %c0_5 = arith.constant 0 : index
    %c0_6 = arith.constant 0 : index
    %4 = vector.load %arg3[%c0_3, %c0_4, %c0_5, %c0_6] : memref<2x32x8x256xf32, #tpu.memory_space<vmem>>, vector<2x32x8x256xf32>
    %cst = arith.constant dense<0.000000e+00> : vector<2x32x8xf32>
    %5 = vector.multi_reduction <add>, %4, %cst [3] : vector<2x32x8x256xf32> to vector<2x32x8xf32>
    %6 = arith.addf %3, %5 : vector<2x32x8xf32>
    %c0_7 = arith.constant 0 : index
    %c0_8 = arith.constant 0 : index
    %c0_9 = arith.constant 0 : index
    %7 = vector.load %arg7[%c0_7, %c0_8, %c0_9] : memref<2x32x8xf32, #tpu.memory_space<vmem>>, vector<2x32x8xf32>
    tpu.vector_store %arg7[%c0_7, %c0_8, %c0_9], %6 {strides = array<i32>} : memref<2x32x8xf32, #tpu.memory_space<vmem>>, vector<2x32x8xf32>,
    %c0_i32_10 = arith.constant 0 : i32
    %8 = arith.cmpi eq, %arg2, %c0_i32_10 : i32
    %9 = arith.extui %8 : i1 to i32
    %c0_i32_11 = arith.constant 0 : i32
    %10 = arith.cmpi ne, %9, %c0_i32_11 : i32
    scf.if %10 {
      %c0_12 = arith.constant 0 : index
      %c0_13 = arith.constant 0 : index
      %c0_14 = arith.constant 0 : index
      %11 = vector.load %arg7[%c0_12, %c0_13, %c0_14] : memref<2x32x8xf32, #tpu.memory_space<vmem>>, vector<2x32x8xf32>
      %cst_15 = arith.constant 3.906250e-03 : f32
      %12 = vector.broadcast %cst_15 : f32 to vector<2x32x8xf32>
      %13 = arith.mulf %11, %12 : vector<2x32x8xf32>
      %14 = tpu.transpose %13, [0, 2, 1] : vector<2x32x8xf32> -> vector<2x8x32xf32>
      %15 = vector.shape_cast %14 : vector<2x8x32xf32> to vector<16x32xf32>
      %c0_16 = arith.constant 0 : index
      %c0_17 = arith.constant 0 : index
      %16 = vector.load %arg4[%c0_16, %c0_17] : memref<32x2xf32, #tpu.memory_space<vmem>>, vector<32x2xf32>
      %cst_18 = arith.constant dense<0.000000e+00> : vector<16x2xf32>
      %17 = tpu.matmul %15, %16, %cst_18 {dimension_numbers = #tpu.dot_dimension_numbers<[1], [0], [0], [1], [0, 0, 1, 1], [], []>} : vector<16x32xf32>, vector<32x2xf32>, vector<16x2xf32> -> vector<16x2xf32>
      %cst_19 = arith.constant 0.000000e+00 : f32
      %18 = vector.broadcast %cst_19 : f32 to vector<16x2xf32>
      %19 = arith.maximumf %17, %18 : vector<16x2xf32>
      %c0_20 = arith.constant 0 : index
      %c0_21 = arith.constant 0 : index
      %20 = vector.load %arg5[%c0_20, %c0_21] : memref<2x32xf32, #tpu.memory_space<vmem>>, vector<2x32xf32>
      %cst_22 = arith.constant dense<0.000000e+00> : vector<16x32xf32>
      %21 = tpu.matmul %19, %20, %cst_22 {dimension_numbers = #tpu.dot_dimension_numbers<[1], [0], [0], [1], [0, 0, 1, 1], [], []>} : vector<16x2xf32>, vector<2x32xf32>, vector<16x32xf32> -> vector<16x32xf32>
      %cst_23 = arith.constant 2.000000e+00 : f32
      %22 = vector.broadcast %cst_23 : f32 to vector<16x32xf32>
      %23 = arith.mulf %22, %21 : vector<16x32xf32>
      %24 = arith.negf %23 : vector<16x32xf32>
      %25 = math.exp %24 : vector<16x32xf32>
      %cst_24 = arith.constant 1.000000e+00 : f32
      %26 = vector.broadcast %cst_24 : f32 to vector<16x32xf32>
      %27 = arith.addf %26, %25 : vector<16x32xf32>
      %28 = arith.divf %26, %27 : vector<16x32xf32>
      %29 = vector.shape_cast %28 : vector<16x32xf32> to vector<2x8x32xf32>
      %c0_25 = arith.constant 0 : index
      %c0_26 = arith.constant 0 : index
      %c0_27 = arith.constant 0 : index
      %30 = vector.load %arg6[%c0_25, %c0_26, %c0_27] : memref<2x8x32xf32, #tpu.memory_space<vmem>>, vector<2x8x32xf32>
      tpu.vector_store %arg6[%c0_25, %c0_26, %c0_27], %29 {strides = array<i32>} : memref<2x8x32xf32, #tpu.memory_space<vmem>>, vector<2x8x32xf32>,
    } else {
    }
    return
  }
  func.func @transform_0(%arg0: i32, %arg1: i32, %arg2: i32) -> (i32, i32, i32, i32) {
    %c0_i32 = arith.constant 0 : i32
    %c0_i32_0 = arith.constant 0 : i32
    return %arg0, %c0_i32, %arg1, %arg2 : i32, i32, i32, i32
  }
  func.func @transform_1(%arg0: i32, %arg1: i32, %arg2: i32) -> (i32, i32) {
    %c0_i32 = arith.constant 0 : i32
    %c0_i32_0 = arith.constant 0 : i32
    %c0_i32_1 = arith.constant 0 : i32
    return %c0_i32, %c0_i32_0 : i32, i32
  }
  func.func @transform_2(%arg0: i32, %arg1: i32, %arg2: i32) -> (i32, i32) {
    %c0_i32 = arith.constant 0 : i32
    %c0_i32_0 = arith.constant 0 : i32
    %c0_i32_1 = arith.constant 0 : i32
    return %c0_i32, %c0_i32_0 : i32, i32
  }
  func.func @transform_3(%arg0: i32, %arg1: i32, %arg2: i32) -> (i32, i32, i32) {
    %c0_i32 = arith.constant 0 : i32
    %c0_i32_0 = arith.constant 0 : i32
    return %arg0, %arg1, %c0_i32 : i32, i32, i32
  }
}

</mosaic_0001>

<bundles_post_ra>
// kernel: tpu_custom_call.1
= control target key start
LH: loop header
LB: loop body
LE: loop exit
PB: predicated region body
PF: predicated region fallthrough
CT: control target
= control target key end

     0   :  { %8 = vsyncpa [#allocation4], 0  ;;  %s1469_s0 = inlined_call_operand.hbm [shape: f32[2,32,8,256], index: 0, kind: input, shape index: {}]   ;;  %s1470_s1 = inlined_call_operand.vmem [shape: f32[32,2], index: 1, kind: input, shape index: {}]   ;;  %s1471_s2 = inlined_call_operand.vmem [shape: f32[2,32], index: 2, kind: input, shape index: {}]   ;;  %s1472_s3 = inlined_call_operand.hbm [shape: f32[2,8,32], index: 3, kind: output, shape index: {}]  }
   0x1   :  { %9 = vsyncpa [#allocation5], 0  ;;  %s1174_s12 = smov [#allocation3]   ;;  %s1126_s16 = scalar_lea.hbm %s1469_s0, 16384 }
   0x2   :  { %s15_s13 = sshll.u32 %s1174_s12, 4  ;;  %p1127_p0 = scmp.ne.s32.totalorder %s1469_s0, %s1126_s16  ;;  %s16_s13 = int_to_ptr.vmem [resolvable:$true] %s15_s13 }
   0x3   :  { %p1130_p1 = scmp.lt.u32.totalorder %s1126_s16, %s1469_s0 }
   0x5   :  { %p1132_p2 = pnand %p1130_p1, %p1127_p0 }
   0x7   :  { %1135 = shalt.err (!%p1132_p2)
}
   0x8   :  { %s1136_s21 = scalar_lea.vmem %s16_s13, 16384  ;;  %p1141_p4 = scmp.lt.s32.totalorder %s16_s13, %s16_s13 }
   0x9   :  { %p1137_p3 = scmp.ne.s32.totalorder %s16_s13, %s1136_s21  ;;  %p1142_p5 = scmp.lt.s32.totalorder %s1136_s21, %s1136_s21 }
   0xb   :  { %p1143_p6 = por %p1142_p5, %p1141_p4 }
   0xd   :  { %p1144_p7 = pnand %p1143_p6, %p1137_p3 }
   0xf   :  { %1147 = shalt.err (!%p1144_p7)
}
  0x10   :  { %s1175_s22 = smov 256   ;;  %s1176_s23 = smov 16  }
  0x11   :  { %21 = dma.hbm_to_vmem [thread:$0]  %s1469_s0, 16384, %s16_s13, [#allocation4], %s1175_s22, %s1175_s22, %s1176_s23  }
  0x12   :  { %1170 = dma.done.wait [#allocation4], 16384  }
  0x13   :  { %1171 = vsyncadd [#allocation4], 4294950912  ;;  %v54_v0 = vld [vmem:[#allocation3 + $0x20] sm:$0xff]  ;;  %v55_v1 = vld [vmem:[#allocation3 + $0x28] sm:$0xff]  ;;  %vm33_vm0 = vcmask 64512   ;;  %vm692_vm1 = vcmask 1041409  }
  0x14   :  { %v50_v2 = vld [vmem:[#allocation3] sm:$0xff]  ;;  %v184_v3 = vadd.f32 %v55_v1, %v54_v0  ;;  %v51_v4 = vld [vmem:[#allocation3 + $0x8] sm:$0xff]  ;;  %v52_v8 = vld [vmem:[#allocation3 + $0x10] sm:$0xff]  ;;  %vm694_vm2 = vcmask 1042434   ;;  %vm696_vm3 = vcmask 1043459   ;;  %vm698_vm4 = vcmask 1044484  }
  0x15   :  { %v114_v5 = vld [vmem:[#allocation3 + $0x200] sm:$0xff]  ;;  %v115_v6 = vld [vmem:[#allocation3 + $0x208] sm:$0xff]  ;;  %v178_v7 = vadd.f32 %v51_v4, %v50_v2  ;;  %v53_v9 = vld [vmem:[#allocation3 + $0x18] sm:$0xff]  ;;  %vm700_vm5 = vcmask 1045509   ;;  %vm702_vm6 = vcmask 1046534   ;;  %vm704_vm7 = vcmask 1047559  }
  0x16   :  { %185 = vadd.xlane.f32.xlu1 %v184_v3  ;;  %v274_v10 = vadd.f32 %v115_v6, %v114_v5  ;;  %v181_v11 = vadd.f32 %v53_v9, %v52_v8  ;;  %v56_v12 = vld [vmem:[#allocation3 + $0x30] sm:$0xff]  ;;  %v57_v13 = vld [vmem:[#allocation3 + $0x38] sm:$0xff]  ;;  %v66_v20 = vld [vmem:[#allocation3 + $0x80] sm:$0xff]  ;;  %vm867_vm8 = vcmask 261120   ;;  %vm959_vm9 = vcmask 1041408  }
  0x17   :  { %179 = vadd.xlane.f32.xlu0 %v178_v7  ;;  %v116_v14 = vld [vmem:[#allocation3 + $0x210] sm:$0xff]  ;;  %v117_v15 = vld [vmem:[#allocation3 + $0x218] sm:$0xff]  ;;  %v187_v16 = vadd.f32 %v57_v13, %v56_v12  ;;  %v67_v21 = vld [vmem:[#allocation3 + $0x88] sm:$0xff]  ;;  %vm952_vm10 = vcmask 15360  }
  0x18   :  { %v277_v17 = vadd.f32 %v117_v15, %v116_v14  ;;  %v68_v18 = vld [vmem:[#allocation3 + $0x90] sm:$0xff]  ;;  %v69_v19 = vld [vmem:[#allocation3 + $0x98] sm:$0xff]  ;;  %v202_v23 = vadd.f32 %v67_v21, %v66_v20  ;;  %v58_v24 = vld [vmem:[#allocation3 + $0x40] sm:$0xff] }
  0x19   :  { %v205_v22 = vadd.f32 %v69_v19, %v68_v18  ;;  %v59_v25 = vld [vmem:[#allocation3 + $0x48] sm:$0xff]  ;;  %v118_v26 = vld [vmem:[#allocation3 + $0x220] sm:$0xff]  ;;  %v120_v30 = vld [vmem:[#allocation3 + $0x230] sm:$0xff] }
  0x1a   :  { %275 = vadd.xlane.f32.xlu1 %v274_v10  ;;  %v119_v27 = vld [vmem:[#allocation3 + $0x228] sm:$0xff]  ;;  %v190_v28 = vadd.f32 %v59_v25, %v58_v24  ;;  %v121_v31 = vld [vmem:[#allocation3 + $0x238] sm:$0xff]  ;;  %v70_v32 = vld [vmem:[#allocation3 + $0xa0] sm:$0xff] }
  0x1b   :  { %182 = vadd.xlane.f32.xlu0 %v181_v11  ;;  %v280_v29 = vadd.f32 %v119_v27, %v118_v26  ;;  %v71_v33 = vld [vmem:[#allocation3 + $0xa8] sm:$0xff]  ;;  %v283_v34 = vadd.f32 %v121_v31, %v120_v30  ;;  %v132_v36 = vld [vmem:[#allocation3 + $0x290] sm:$0xff]  ;;  %v133_v37 = vld [vmem:[#allocation3 + $0x298] sm:$0xff] }
  0x1c   :  { %v208_v35 = vadd.f32 %v71_v33, %v70_v32  ;;  %v130_v38 = vld [vmem:[#allocation3 + $0x280] sm:$0xff]  ;;  %v131_v39 = vld [vmem:[#allocation3 + $0x288] sm:$0xff]  ;;  %v301_v40 = vadd.f32 %v133_v37, %v132_v36  ;;  %v72_v42 = vld [vmem:[#allocation3 + $0xb0] sm:$0xff] }
  0x1d   :  { %v298_v41 = vadd.f32 %v131_v39, %v130_v38  ;;  %v73_v43 = vld [vmem:[#allocation3 + $0xb8] sm:$0xff]  ;;  %v60_v44 = vld [vmem:[#allocation3 + $0x50] sm:$0xff]  ;;  %v82_v50 = vld [vmem:[#allocation3 + $0x100] sm:$0xff] }
  0x1e   :  { %188 = vadd.xlane.f32.xlu1 %v187_v16  ;;  %v61_v45 = vld [vmem:[#allocation3 + $0x58] sm:$0xff]  ;;  %v211_v46 = vadd.f32 %v73_v43, %v72_v42  ;;  %v84_v48 = vld [vmem:[#allocation3 + $0x110] sm:$0xff]  ;;  %v83_v51 = vld [vmem:[#allocation3 + $0x108] sm:$0xff]  ;;  %v1177_v42 = vmov 0.0  }
  0x1f   :  { %278 = vadd.xlane.f32.xlu0 %v277_v17  ;;  %v193_v47 = vadd.f32 %v61_v45, %v60_v44  ;;  %v85_v49 = vld [vmem:[#allocation3 + $0x118] sm:$0xff]  ;;  %v226_v53 = vadd.f32 %v83_v51, %v82_v50  ;;  %v134_v54 = vld [vmem:[#allocation3 + $0x2a0] sm:$0xff]  ;;  %v135_v55 = vld [vmem:[#allocation3 + $0x2a8] sm:$0xff]  ;;  %34 = vst.msk [vmem:[#allocation2] sm:$0xff] %vm33_vm0, %v1177_v42 }
  0x20   :  { %v229_v52 = vadd.f32 %v85_v49, %v84_v48  ;;  %v122_v56 = vld [vmem:[#allocation3 + $0x240] sm:$0xff]  ;;  %v123_v57 = vld [vmem:[#allocation3 + $0x248] sm:$0xff]  ;;  %v304_v58 = vadd.f32 %v135_v55, %v134_v54  ;;  %v124_v2 = vld [vmem:[#allocation3 + $0x250] sm:$0xff]  ;;  %35 = vst.msk [vmem:[#allocation2 + $0x8] sm:$0xff] %vm33_vm0, %v1177_v42 }
  0x21   :  { %v286_v59 = vadd.f32 %v123_v57, %v122_v56  ;;  %v74_v60 = vld [vmem:[#allocation3 + $0xc0] sm:$0xff]  ;;  %v75_v61 = vld [vmem:[#allocation3 + $0xc8] sm:$0xff]  ;;  %v125_v3 = vld [vmem:[#allocation3 + $0x258] sm:$0xff]  ;;  %36 = vst.msk [vmem:[#allocation2 + $0x10] sm:$0xff] %vm33_vm0, %v1177_v42 }
  0x22   :  { %206 = vadd.xlane.f32.xlu1 %v205_v22  ;;  %v62_v62 = vld [vmem:[#allocation3 + $0x60] sm:$0xff]  ;;  %v63_v63 = vld [vmem:[#allocation3 + $0x68] sm:$0xff]  ;;  %v214_v0 = vadd.f32 %v75_v61, %v74_v60  ;;  %v289_v6 = vadd.f32 %v125_v3, %v124_v2  ;;  %v136_v10 = vld [vmem:[#allocation3 + $0x2b0] sm:$0xff]  ;;  %37 = vst.msk [vmem:[#allocation2 + $0x18] sm:$0xff] %vm33_vm0, %v1177_v42 }
  0x23   :  { %203 = vadd.xlane.f32.xlu0 %v202_v23  ;;  %v196_v1 = vadd.f32 %v63_v63, %v62_v62  ;;  %v86_v4 = vld [vmem:[#allocation3 + $0x120] sm:$0xff]  ;;  %v87_v5 = vld [vmem:[#allocation3 + $0x128] sm:$0xff]  ;;  %v137_v11 = vld [vmem:[#allocation3 + $0x2b8] sm:$0xff]  ;;  %38 = vst.msk [vmem:[#allocation2 + $0x20] sm:$0xff] %vm33_vm0, %v1177_v42 }
  0x24   :  { %v232_v7 = vadd.f32 %v87_v5, %v86_v4  ;;  %v146_v8 = vld [vmem:[#allocation3 + $0x300] sm:$0xff]  ;;  %v147_v9 = vld [vmem:[#allocation3 + $0x308] sm:$0xff]  ;;  %v307_v13 = vadd.f32 %v137_v11, %v136_v10  ;;  %v64_v14 = vld [vmem:[#allocation3 + $0x70] sm:$0xff]  ;;  %39 = vst.msk [vmem:[#allocation2 + $0x28] sm:$0xff] %vm33_vm0, %v1177_v42 }
  0x25   :  { %v322_v12 = vadd.f32 %v147_v9, %v146_v8  ;;  %v65_v15 = vld [vmem:[#allocation3 + $0x78] sm:$0xff]  ;;  %v148_v16 = vld [vmem:[#allocation3 + $0x310] sm:$0xff]  ;;  %v138_v32 = vld [vmem:[#allocation3 + $0x2c0] sm:$0xff]  ;;  %40 = vst.msk [vmem:[#allocation2 + $0x30] sm:$0xff] %vm33_vm0, %v1177_v42 }
  0x26   :  { %191 = vadd.xlane.f32.xlu1 %v190_v28  ;;  %v149_v17 = vld [vmem:[#allocation3 + $0x318] sm:$0xff]  ;;  %v199_v18 = vadd.f32 %v65_v15, %v64_v14  ;;  %v88_v20 = vld [vmem:[#allocation3 + $0x130] sm:$0xff]  ;;  %v98_v28 = vld [vmem:[#allocation3 + $0x180] sm:$0xff]  ;;  %41 = vst.msk [vmem:[#allocation2 + $0x38] sm:$0xff] %vm33_vm0, %v1177_v42 }
  0x27   :  { %281 = vadd.xlane.f32.xlu0 %v280_v29  ;;  %v325_v19 = vadd.f32 %v149_v17, %v148_v16  ;;  %v89_v21 = vld [vmem:[#allocation3 + $0x138] sm:$0xff]  ;;  %v76_v22 = vld [vmem:[#allocation3 + $0xd0] sm:$0xff]  ;;  %v99_v29 = vld [vmem:[#allocation3 + $0x188] sm:$0xff] }
  0x28   :  { %v77_v23 = vld [vmem:[#allocation3 + $0xd8] sm:$0xff]  ;;  %v235_v24 = vadd.f32 %v89_v21, %v88_v20  ;;  %v100_v26 = vld [vmem:[#allocation3 + $0x190] sm:$0xff]  ;;  %v250_v31 = vadd.f32 %v99_v29, %v98_v28  ;;  %v139_v33 = vld [vmem:[#allocation3 + $0x2c8] sm:$0xff] }
  0x29   :  { %v217_v25 = vadd.f32 %v77_v23, %v76_v22  ;;  %v101_v27 = vld [vmem:[#allocation3 + $0x198] sm:$0xff]  ;;  %v310_v36 = vadd.f32 %v139_v33, %v138_v32  ;;  %v78_v38 = vld [vmem:[#allocation3 + $0xe0] sm:$0xff]  ;;  %v79_v39 = vld [vmem:[#allocation3 + $0xe8] sm:$0xff] }
  0x2a   :  { %284 = vadd.xlane.f32.xlu1 %v283_v34  ;;  %v253_v30 = vadd.f32 %v101_v27, %v100_v26  ;;  %v126_v34 = vld [vmem:[#allocation3 + $0x260] sm:$0xff]  ;;  %v220_v43 = vadd.f32 %v79_v39, %v78_v38  ;;  %v91_v48 = vld [vmem:[#allocation3 + $0x148] sm:$0xff]  ;;  %v140_v51 = vld [vmem:[#allocation3 + $0x2d0] sm:$0xff] }
  0x2b   :  { %209 = vadd.xlane.f32.xlu0 %v208_v35  ;;  %v127_v35 = vld [vmem:[#allocation3 + $0x268] sm:$0xff]  ;;  %v102_v45 = vld [vmem:[#allocation3 + $0x1a0] sm:$0xff]  ;;  %v129_v54 = vld [vmem:[#allocation3 + $0x278] sm:$0xff] }
  0x2c   :  { %v292_v37 = vadd.f32 %v127_v35, %v126_v34  ;;  %v162_v57 = vld [vmem:[#allocation3 + $0x380] sm:$0xff]  ;;  %v153_v60 = vld [vmem:[#allocation3 + $0x338] sm:$0xff]  ;;  %v80_v63 = vld [vmem:[#allocation3 + $0xf0] sm:$0xff] }
  0x2d   :  { %v165_v2 = vld [vmem:[#allocation3 + $0x398] sm:$0xff]  ;;  %v104_v5 = vld [vmem:[#allocation3 + $0x1b0] sm:$0xff]  ;;  %v154_v11 = vld [vmem:[#allocation3 + $0x340] sm:$0xff] }
  0x2e   :  { %302 = vadd.xlane.f32.xlu1 %v301_v40  ;;  %v150_v40 = vld [vmem:[#allocation3 + $0x320] sm:$0xff]  ;;  %v93_v8 = vld [vmem:[#allocation3 + $0x158] sm:$0xff]  ;;  %v143_v14 = vld [vmem:[#allocation3 + $0x2e8] sm:$0xff] }
  0x2f   :  { %299 = vadd.xlane.f32.xlu0 %v298_v41  ;;  %v151_v41 = vld [vmem:[#allocation3 + $0x328] sm:$0xff]  ;;  %v94_v17 = vld [vmem:[#allocation3 + $0x160] sm:$0xff]  ;;  %v144_v23 = vld [vmem:[#allocation3 + $0x2f0] sm:$0xff] }
  0x30   :  { %v328_v44 = vadd.f32 %v151_v41, %v150_v40  ;;  %v167_v20 = vld [vmem:[#allocation3 + $0x3a8] sm:$0xff]  ;;  %v168_v29 = vld [vmem:[#allocation3 + $0x3b0] sm:$0xff]  ;;  %v157_v32 = vld [vmem:[#allocation3 + $0x358] sm:$0xff] }
  0x31   :  { %v107_v26 = vld [vmem:[#allocation3 + $0x1c8] sm:$0xff]  ;;  %v108_v35 = vld [vmem:[#allocation3 + $0x1d0] sm:$0xff]  ;;  %v97_v38 = vld [vmem:[#allocation3 + $0x178] sm:$0xff] }
  0x32   :  { %212 = vadd.xlane.f32.xlu1 %v211_v46  ;;  %v103_v46 = vld [vmem:[#allocation3 + $0x1a8] sm:$0xff]  ;;  %v170_v41 = vld [vmem:[#allocation3 + $0x3c0] sm:$0xff] }
  0x33   :  { %194 = vadd.xlane.f32.xlu0 %v193_v47  ;;  %v90_v47 = vld [vmem:[#allocation3 + $0x140] sm:$0xff]  ;;  %v256_v49 = vadd.f32 %v103_v46, %v102_v45  ;;  %v171_v42 = vld [vmem:[#allocation3 + $0x3c8] sm:$0xff] }
  0x34   :  { %v238_v50 = vadd.f32 %v91_v48, %v90_v47  ;;  %v358_v45 = vadd.f32 %v171_v42, %v170_v41  ;;  %v160_v47 = vld [vmem:[#allocation3 + $0x370] sm:$0xff]  ;;  %v161_v48 = vld [vmem:[#allocation3 + $0x378] sm:$0xff] }
  0x36   :  { %230 = vadd.xlane.f32.xlu1 %v229_v52  ;;  %v141_v52 = vld [vmem:[#allocation3 + $0x2d8] sm:$0xff] }
  0x37   :  { %227 = vadd.xlane.f32.xlu0 %v226_v53  ;;  %v128_v53 = vld [vmem:[#allocation3 + $0x270] sm:$0xff]  ;;  %v313_v55 = vadd.f32 %v141_v52, %v140_v51  ;;  %v343_v51 = vadd.f32 %v161_v48, %v160_v47 }
  0x38   :  { %v295_v56 = vadd.f32 %v129_v54, %v128_v53  ;;  %v112_v53 = vld [vmem:[#allocation3 + $0x1f0] sm:$0xff]  ;;  %v113_v54 = vld [vmem:[#allocation3 + $0x1f8] sm:$0xff] }
  0x3a   :  { %305 = vadd.xlane.f32.xlu1 %v304_v58  ;;  %v163_v58 = vld [vmem:[#allocation3 + $0x388] sm:$0xff] }
  0x3b   :  { %287 = vadd.xlane.f32.xlu0 %v286_v59  ;;  %v152_v59 = vld [vmem:[#allocation3 + $0x330] sm:$0xff]  ;;  %v346_v61 = vadd.f32 %v163_v58, %v162_v57  ;;  %v271_v57 = vadd.f32 %v113_v54, %v112_v53 }
  0x3c   :  { %v331_v62 = vadd.f32 %v153_v60, %v152_v59  ;;  %v176_v59 = vld [vmem:[#allocation3 + $0x3f0] sm:$0xff]  ;;  %v177_v60 = vld [vmem:[#allocation3 + $0x3f8] sm:$0xff] }
  0x3e   :  { %215 = vadd.xlane.f32.xlu1 %v214_v0  ;;  %v81_v0 = vld [vmem:[#allocation3 + $0xf8] sm:$0xff] }
  0x3f   :  { %197 = vadd.xlane.f32.xlu0 %v196_v1  ;;  %v164_v1 = vld [vmem:[#allocation3 + $0x390] sm:$0xff]  ;;  %v223_v3 = vadd.f32 %v81_v0, %v80_v63  ;;  %v367_v63 = vadd.f32 %v177_v60, %v176_v59  ;;  %v42_v59 = vld [vmem:[#allocation2] sm:$0xff] }
  0x40   :  { %v349_v4 = vadd.f32 %v165_v2, %v164_v1 }
  0x42   :  { %290 = vadd.xlane.f32.xlu1 %v289_v6  ;;  %v105_v6 = vld [vmem:[#allocation3 + $0x1b8] sm:$0xff] }
  0x43   :  { %233 = vadd.xlane.f32.xlu0 %v232_v7  ;;  %v92_v7 = vld [vmem:[#allocation3 + $0x150] sm:$0xff]  ;;  %v259_v9 = vadd.f32 %v105_v6, %v104_v5 }
  0x44   :  { %v241_v10 = vadd.f32 %v93_v8, %v92_v7 }
  0x46   :  { %323 = vadd.xlane.f32.xlu1 %v322_v12  ;;  %v155_v12 = vld [vmem:[#allocation3 + $0x348] sm:$0xff] }
  0x47   :  { %308 = vadd.xlane.f32.xlu0 %v307_v13  ;;  %v142_v13 = vld [vmem:[#allocation3 + $0x2e0] sm:$0xff]  ;;  %v334_v15 = vadd.f32 %v155_v12, %v154_v11 }
  0x48   :  { %v316_v16 = vadd.f32 %v143_v14, %v142_v13 }
  0x4a   :  { %200 = vadd.xlane.f32.xlu1 %v199_v18  ;;  %v95_v18 = vld [vmem:[#allocation3 + $0x168] sm:$0xff] }
  0x4b   :  { %326 = vadd.xlane.f32.xlu0 %v325_v19  ;;  %v166_v19 = vld [vmem:[#allocation3 + $0x3a0] sm:$0xff]  ;;  %v244_v21 = vadd.f32 %v95_v18, %v94_v17  ;;  %v865_v17 = vld [vmem:[%s1470_s1 + $0x10] sm:$0xff] }
  0x4c   :  { %v352_v22 = vadd.f32 %v167_v20, %v166_v19  ;;  %v866_v19 = vld [vmem:[%s1470_s1 + $0x18] sm:$0xff] }
  0x4e   :  { %236 = vadd.xlane.f32.xlu1 %v235_v24  ;;  %v145_v24 = vld [vmem:[#allocation3 + $0x2f8] sm:$0xff] }
  0x4f   :  { %218 = vadd.xlane.f32.xlu0 %v217_v25  ;;  %v106_v25 = vld [vmem:[#allocation3 + $0x1c0] sm:$0xff]  ;;  %v319_v27 = vadd.f32 %v145_v24, %v144_v23 }
  0x50   :  { %v262_v28 = vadd.f32 %v107_v26, %v106_v25 }
  0x52   :  { %254 = vadd.xlane.f32.xlu1 %v253_v30  ;;  %v169_v30 = vld [vmem:[#allocation3 + $0x3b8] sm:$0xff] }
  0x53   :  { %251 = vadd.xlane.f32.xlu0 %v250_v31  ;;  %v156_v31 = vld [vmem:[#allocation3 + $0x350] sm:$0xff]  ;;  %v355_v33 = vadd.f32 %v169_v30, %v168_v29 }
  0x54   :  { %v337_v34 = vadd.f32 %v157_v32, %v156_v31 }
  0x56   :  { %311 = vadd.xlane.f32.xlu1 %v310_v36  ;;  %v109_v36 = vld [vmem:[#allocation3 + $0x1d8] sm:$0xff] }
  0x57   :  { %293 = vadd.xlane.f32.xlu0 %v292_v37  ;;  %v96_v37 = vld [vmem:[#allocation3 + $0x170] sm:$0xff]  ;;  %v265_v39 = vadd.f32 %v109_v36, %v108_v35 }
  0x58   :  { %v247_v40 = vadd.f32 %v97_v38, %v96_v37 }
  0x5a   :  { %221 = vadd.xlane.f32.xlu1 %v220_v43  ;;  %v158_v43 = vld [vmem:[#allocation3 + $0x360] sm:$0xff] }
  0x5b   :  { %329 = vadd.xlane.f32.xlu0 %v328_v44  ;;  %v159_v44 = vld [vmem:[#allocation3 + $0x368] sm:$0xff] }
  0x5c   :  { %v340_v46 = vadd.f32 %v159_v44, %v158_v43 }
  0x5e   :  { %257 = vadd.xlane.f32.xlu1 %v256_v49  ;;  %v110_v49 = vld [vmem:[#allocation3 + $0x1e0] sm:$0xff] }
  0x5f   :  { %239 = vadd.xlane.f32.xlu0 %v238_v50  ;;  %v111_v50 = vld [vmem:[#allocation3 + $0x1e8] sm:$0xff] }
  0x60   :  { %v268_v52 = vadd.f32 %v111_v50, %v110_v49 }
  0x62   :  { %314 = vadd.xlane.f32.xlu1 %v313_v55  ;;  %v172_v55 = vld [vmem:[#allocation3 + $0x3d0] sm:$0xff] }
  0x63   :  { %296 = vadd.xlane.f32.xlu0 %v295_v56  ;;  %v173_v56 = vld [vmem:[#allocation3 + $0x3d8] sm:$0xff] }
  0x64   :  { %v361_v58 = vadd.f32 %v173_v56, %v172_v55 }
  0x66   :  { %347 = vadd.xlane.f32.xlu1 %v346_v61  ;;  %v174_v61 = vld [vmem:[#allocation3 + $0x3e0] sm:$0xff] }
  0x67   :  { %332 = vadd.xlane.f32.xlu0 %v331_v62  ;;  %v175_v62 = vld [vmem:[#allocation3 + $0x3e8] sm:$0xff] }
  0x68   :  { %v364_v0 = vadd.f32 %v175_v62, %v174_v61 }
  0x6a   :  { %224 = vadd.xlane.f32.xlu1 %v223_v3  ;;  %v434_v3 = vlaneseq }
  0x6b   :  { %350 = vadd.xlane.f32.xlu0 %v349_v4 }
  0x6c   :  { %v435_v6 = vand.u32 127, %v434_v3  ;;  %v437_v7 = vshrl.u32 %v434_v3, 7 }
  0x6e   :  { %260 = vadd.xlane.f32.xlu1 %v259_v9 }
  0x6f   :  { %242 = vadd.xlane.f32.xlu0 %v241_v10  ;;  %v1225_v10 = vsub.s32 %v435_v6, %v437_v7 }
  0x72   :  { %335 = vadd.xlane.f32.xlu1 %v334_v15  ;;  %v863_v15 = vld [vmem:[%s1470_s1] sm:$0xff] }
  0x73   :  { %317 = vadd.xlane.f32.xlu0 %v316_v16  ;;  %v864_v16 = vld [vmem:[%s1470_s1 + $0x8] sm:$0xff] }
  0x74   :  { %v1103_v18 = vpack.c.bf16 %v864_v16, %v863_v15 }
  0x76   :  { %245 = vadd.xlane.f32.xlu1 %v244_v21  ;;  %1104 = vmatprep.subr.bf16.mxu0 %v1103_v18 }
  0x77   :  { %353 = vadd.xlane.f32.xlu0 %v352_v22  ;;  %v1107_v22 = vpack.c.bf16 %v866_v19, %v865_v17  ;;  %1106 = vmatpush3.bf16.msra.mxu0 %v1103_v18 }
  0x79   :  { %1108 = vmatprep.subr.bf16.mxu0 %v1107_v22 }
  0x7a   :  { %320 = vadd.xlane.f32.xlu1 %v319_v27 }
  0x7b   :  { %263 = vadd.xlane.f32.xlu0 %v262_v28  ;;  %1110 = vmatpush3.bf16.msra.mxu0 %v1107_v22 }
  0x7e   :  { %356 = vadd.xlane.f32.xlu1 %v355_v33 }
  0x7f   :  { %338 = vadd.xlane.f32.xlu0 %v337_v34 }
  0x82   :  { %266 = vadd.xlane.f32.xlu1 %v265_v39 }
  0x83   :  { %248 = vadd.xlane.f32.xlu0 %v247_v40 }
  0x86   :  { %359 = vadd.xlane.f32.xlu1 %v358_v45 }
  0x87   :  { %341 = vadd.xlane.f32.xlu0 %v340_v46 }
  0x8a   :  { %344 = vadd.xlane.f32.xlu1 %v343_v51 }
  0x8b   :  { %269 = vadd.xlane.f32.xlu0 %v268_v52 }
  0x8e   :  { %272 = vadd.xlane.f32.xlu1 %v271_v57 }
  0x8f   :  { %362 = vadd.xlane.f32.xlu0 %v361_v58 }
  0x92   :  { %368 = vadd.xlane.f32.xlu1 %v367_v63 }
  0x93   :  { %365 = vadd.xlane.f32.xlu0 %v364_v0 }
  0xa3   :  { %v186_v1 = vpop.xlane.xlu1 %185 }
  0xa4   :  { %v180_v2 = vpop.xlane.xlu0 %179  ;;  %v447_v48 = vrot.slane %v186_v1, %v1225_v10 }
  0xa5   :  { %v439_v44 = vrot.slane %v180_v2, %v1225_v10 }
  0xa7   :  { %v1221_v4 = vpop.xlane.xlu1 %275 }
  0xa8   :  { %v183_v5 = vpop.xlane.xlu0 %182  ;;  %v567_v16 = vrot.slane %v1221_v4, %v1225_v10 }
  0xa9   :  { %v443_v42 = vrot.slane %v183_v5, %v1225_v10 }
  0xab   :  { %v189_v8 = vpop.xlane.xlu1 %188  ;;  %v693_v46 = vsel %vm692_vm1, %v443_v42, %v439_v44 }
  0xac   :  { %v1223_v9 = vpop.xlane.xlu0 %278  ;;  %v451_v47 = vrot.slane %v189_v8, %v1225_v10  ;;  %v695_v53 = vsel %vm694_vm2, %v447_v48, %v693_v46 }
  0xae   :  { %v697_v55 = vsel %vm696_vm3, %v451_v47, %v695_v53 }
  0xaf   :  { %v207_v11 = vpop.xlane.xlu1 %206 }
  0xb0   :  { %v475_v12 = vrot.slane %v207_v11, %v1225_v10  ;;  %v204_v13 = vpop.xlane.xlu0 %203 }
  0xb1   :  { %v471_v14 = vrot.slane %v204_v13, %v1225_v10 }
  0xb3   :  { %v1242_v20 = vsel %vm692_vm1, %v475_v12, %v471_v14  ;;  %v192_v21 = vpop.xlane.xlu1 %191  ;;  %v571_v14 = vrot.slane %v1223_v9, %v1225_v10 }
  0xb4   :  { %v1244_v23 = vpop.xlane.xlu0 %281  ;;  %v455_v49 = vrot.slane %v192_v21, %v1225_v10 }
  0xb5   :  { %v575_v15 = vrot.slane %v1244_v23, %v1225_v10  ;;  %v727_v22 = vsel %vm692_vm1, %v571_v14, %v567_v16 }
  0xb6   :  { %v699_v56 = vsel %vm698_vm4, %v455_v49, %v697_v55 }
  0xb7   :  { %v1246_v24 = vpop.xlane.xlu1 %284  ;;  %v728_v9 = vsel %vm694_vm2, %v575_v15, %v727_v22  ;;  %v47_v22 = vld [vmem:[#allocation2 + $0x28] sm:$0xff] }
  0xb8   :  { %v1248_v25 = vpop.xlane.xlu0 %209  ;;  %v579_v17 = vrot.slane %v1246_v24, %v1225_v10 }
  0xbb   :  { %v303_v26 = vpop.xlane.xlu1 %302 }
  0xbc   :  { %v603_v27 = vrot.slane %v303_v26, %v1225_v10  ;;  %v300_v28 = vpop.xlane.xlu0 %299 }
  0xbd   :  { %v599_v29 = vrot.slane %v300_v28, %v1225_v10 }
  0xbf   :  { %v1253_v30 = vsel %vm692_vm1, %v603_v27, %v599_v29  ;;  %v1255_v31 = vpop.xlane.xlu1 %212  ;;  %v729_v27 = vsel %vm696_vm3, %v579_v17, %v728_v9  ;;  %v479_v29 = vrot.slane %v1248_v25, %v1225_v10 }
  0xc0   :  { %v195_v32 = vpop.xlane.xlu0 %194 }
  0xc1   :  { %v459_v51 = vrot.slane %v195_v32, %v1225_v10  ;;  %v707_v46 = vsel %vm694_vm2, %v479_v29, %v1242_v20 }
  0xc3   :  { %v231_v33 = vpop.xlane.xlu1 %230  ;;  %v701_v58 = vsel %vm700_vm5, %v459_v51, %v699_v56  ;;  %v43_v51 = vld [vmem:[#allocation2 + $0x8] sm:$0xff] }
  0xc4   :  { %v507_v34 = vrot.slane %v231_v33, %v1225_v10  ;;  %v228_v35 = vpop.xlane.xlu0 %227  ;;  %v46_v33 = vld [vmem:[#allocation2 + $0x20] sm:$0xff] }
  0xc5   :  { %v503_v36 = vrot.slane %v228_v35, %v1225_v10  ;;  %v483_v35 = vrot.slane %v1255_v31, %v1225_v10 }
  0xc7   :  { %v1260_v37 = vsel %vm692_vm1, %v507_v34, %v503_v36  ;;  %v1262_v38 = vpop.xlane.xlu1 %305  ;;  %v708_v31 = vsel %vm696_vm3, %v483_v35, %v707_v46 }
  0xc8   :  { %v288_v39 = vpop.xlane.xlu0 %287 }
  0xc9   :  { %v583_v19 = vrot.slane %v288_v39, %v1225_v10 }
  0xcb   :  { %v1264_v40 = vpop.xlane.xlu1 %215  ;;  %v730_v28 = vsel %vm698_vm4, %v583_v19, %v729_v27 }
  0xcc   :  { %v198_v41 = vpop.xlane.xlu0 %197  ;;  %v487_v39 = vrot.slane %v1264_v40, %v1225_v10 }
  0xcd   :  { %v463_v54 = vrot.slane %v198_v41, %v1225_v10 }
  0xce   :  { %v709_v40 = vsel %vm698_vm4, %v487_v39, %v708_v31 }
  0xcf   :  { %v291_v43 = vpop.xlane.xlu1 %290  ;;  %v703_v62 = vsel %vm702_vm6, %v463_v54, %v701_v58 }
  0xd0   :  { %v1268_v45 = vpop.xlane.xlu0 %233  ;;  %v587_v26 = vrot.slane %v291_v43, %v1225_v10 }
  0xd2   :  { %v731_v32 = vsel %vm700_vm5, %v587_v26, %v730_v28 }
  0xd3   :  { %v1274_v50 = vpop.xlane.xlu1 %323 }
  0xd4   :  { %v1277_v52 = vpop.xlane.xlu0 %308 }
  0xd7   :  { %v201_v57 = vpop.xlane.xlu1 %200 }
  0xd8   :  { %v467_v60 = vrot.slane %v201_v57, %v1225_v10  ;;  %v1285_v61 = vpop.xlane.xlu0 %326 }
  0xd9   :  { %v635_v35 = vrot.slane %v1285_v61, %v1225_v10 }
  0xda   :  { %v705_v63 = vsel %vm704_vm7, %v467_v60, %v703_v62 }
  0xdb   :  { %v763_v0 = vadd.f32 %v705_v63, %v42_v59  ;;  %v1289_v1 = vpop.xlane.xlu1 %236 }
  0xdc   :  { %v219_v2 = vpop.xlane.xlu0 %218 }
  0xdd   :  { %772 = vst.msk [vmem:[#allocation2] sm:$0xff] %vm33_vm0, %v763_v0  ;;  %v491_v43 = vrot.slane %v219_v2, %v1225_v10  ;;  %v607_v0 = vrot.slane %v1262_v38, %v1225_v10  ;;  %v611_v2 = vrot.slane %v1277_v52, %v1225_v10 }
  0xdf   :  { %v1292_v3 = vpop.xlane.xlu1 %254  ;;  %v710_v49 = vsel %vm700_vm5, %v491_v43, %v709_v40  ;;  %v735_v15 = vsel %vm694_vm2, %v607_v0, %v1253_v30  ;;  %v511_v30 = vrot.slane %v1268_v45, %v1225_v10 }
  0xe0   :  { %v1294_v5 = vpop.xlane.xlu0 %251  ;;  %v736_v38 = vsel %vm696_vm3, %v611_v2, %v735_v15 }
  0xe3   :  { %v1296_v6 = vpop.xlane.xlu1 %311 }
  0xe4   :  { %v294_v7 = vpop.xlane.xlu0 %293  ;;  %v783_v8 = vld [vmem:[#allocation2] sm:$0xff] }
  0xe5   :  { %v791_v11 = vmul.f32 0.00390625, %v783_v8  ;;  %v591_v23 = vrot.slane %v294_v7, %v1225_v10  ;;  %v615_v7 = vrot.slane %v1296_v6, %v1225_v10 }
  0xe7   :  { %v222_v12 = vpop.xlane.xlu1 %221  ;;  %799 = vxpose.xlu0.b32.start [1/4] (short) (narrow) %v791_v11, 8  ;;  %v732_v36 = vsel %vm702_vm6, %v591_v23, %v731_v32  ;;  %v737_v19 = vsel %vm698_vm4, %v615_v7, %v736_v38  ;;  %v48_v7 = vld [vmem:[#allocation2 + $0x30] sm:$0xff] }
  0xe8   :  { %v1298_v13 = vpop.xlane.xlu0 %329  ;;  %v495_v47 = vrot.slane %v222_v12, %v1225_v10 }
  0xe9   :  { %v639_v43 = vrot.slane %v1298_v13, %v1225_v10  ;;  %v539_v13 = vrot.slane %v1292_v3, %v1225_v10 }
  0xea   :  { %v711_v55 = vsel %vm702_vm6, %v495_v47, %v710_v49  ;;  %v535_v49 = vrot.slane %v1294_v5, %v1225_v10 }
  0xeb   :  { %v1308_v18 = vpop.xlane.xlu1 %257 }
  0xec   :  { %v1311_v21 = vpop.xlane.xlu0 %239  ;;  %v720_v0 = vsel %vm692_vm1, %v539_v13, %v535_v49  ;;  %v951_v49 = vld [vmem:[%s1471_s2] sm:$0x3]  ;;  %s1178_s2 = smov [#allocation6]  }
  0xed   :  { %v519_v29 = vrot.slane %v1311_v21, %v1225_v10  ;;  %v631_v21 = vrot.slane %v1274_v50, %v1225_v10  ;;  %1098 = vmatprep.subr.msk.mxu1 %vm959_vm9, %v951_v49  ;;  %s1059_s7 = sshll.u32 %s1178_s2, 4  ;;  %s1060_s7 = int_to_ptr.vmem [resolvable:$true] %s1059_s7 }
  0xee   :  { %1099 = vmatpush3.msk.msra.mxu1 %vm959_vm9, %v951_v49  ;;  %s1148_s8 = scalar_lea.vmem %s1060_s7, 256  ;;  %p1153_p9 = scmp.lt.s32.totalorder %s1060_s7, %s1060_s7 }
  0xef   :  { %v315_v4 = vpop.xlane.xlu1 %314  ;;  %v741_v31 = vsel %vm692_vm1, %v635_v35, %v631_v21  ;;  %p1149_p8 = scmp.ne.s32.totalorder %s1060_s7, %s1148_s8  ;;  %p1154_p10 = scmp.lt.s32.totalorder %s1148_s8, %s1148_s8 }
  0xf0   :  { %v297_v24 = vpop.xlane.xlu0 %296  ;;  %v619_v11 = vrot.slane %v315_v4, %v1225_v10  ;;  %v515_v4 = vrot.slane %v1289_v1, %v1225_v10 }
  0xf1   :  { %v595_v34 = vrot.slane %v297_v24, %v1225_v10  ;;  %p1155_p11 = por %p1154_p10, %p1153_p9 }
  0xf2   :  { %v738_v6 = vsel %vm700_vm5, %v619_v11, %v737_v19 }
  0xf3   :  { %v733_v41 = vsel %vm704_vm7, %v595_v34, %v732_v36  ;;  %v1329_v42 = vpop.xlane.xlu1 %347  ;;  %v714_v34 = vsel %vm694_vm2, %v511_v30, %v1260_v37  ;;  %v44_v37 = vld [vmem:[#allocation2 + $0x10] sm:$0xff]  ;;  %p1156_p12 = pnand %p1155_p11, %p1149_p8 }
  0xf4   :  { %v767_v25 = vadd.f32 %v733_v41, %v46_v33  ;;  %v1332_v44 = vpop.xlane.xlu0 %332  ;;  %v715_v1 = vsel %vm696_vm3, %v515_v4, %v714_v34 }
  0xf5   :  { %v716_v39 = vsel %vm698_vm4, %v519_v29, %v715_v1  ;;  %v643_v61 = vrot.slane %v1332_v44, %v1225_v10 }
  0xf6   :  { %776 = vst.msk [vmem:[#allocation2 + $0x20] sm:$0xff] %vm33_vm0, %v767_v25 }
  0xf7   :  { %v225_v48 = vpop.xlane.xlu1 %224 }
  0xf8   :  { %v499_v53 = vrot.slane %v225_v48, %v1225_v10  ;;  %v1342_v54 = vpop.xlane.xlu0 %350 }
  0xfa   :  { %v712_v20 = vsel %vm704_vm7, %v499_v53, %v711_v55 }
  0xfb   :  { %v764_v56 = vadd.f32 %v712_v20, %v43_v51  ;;  %v1346_v57 = vpop.xlane.xlu1 %260  ;;  %v742_v20 = vsel %vm694_vm2, %v639_v43, %v741_v31  ;;  %v49_v43 = vld [vmem:[#allocation2 + $0x38] sm:$0xff] }
  0xfc   :  { %v243_v58 = vpop.xlane.xlu0 %242  ;;  %v547_v3 = vrot.slane %v1346_v57, %v1225_v10 }
  0xfd   :  { %773 = vst.msk [vmem:[#allocation2 + $0x8] sm:$0xff] %vm33_vm0, %v764_v56  ;;  %v787_v59 = vld [vmem:[#allocation2 + $0x20] sm:$0xff]  ;;  %v523_v33 = vrot.slane %v243_v58, %v1225_v10  ;;  %v543_v56 = vrot.slane %v1308_v18, %v1225_v10 }
  0xfe   :  { %v795_v60 = vmul.f32 0.00390625, %v787_v59 }
  0xff   :  { %v1349_v62 = vpop.xlane.xlu1 %335  ;;  %v717_v25 = vsel %vm700_vm5, %v523_v33, %v716_v39  ;;  %v721_v57 = vsel %vm694_vm2, %v543_v56, %v720_v0 }
 0x100   :  { %v318_v63 = vpop.xlane.xlu0 %317  ;;  %831 = vxpose.xlu1.b32.start [1/4] (short) (narrow) %v795_v60, 8  ;;  %v647_v40 = vrot.slane %v1349_v62, %v1225_v10  ;;  %v743_v60 = vsel %vm696_vm3, %v643_v61, %v742_v20 }
 0x101   :  { %v623_v16 = vrot.slane %v318_v63, %v1225_v10 }
 0x102   :  { %v744_v5 = vsel %vm698_vm4, %v647_v40, %v743_v60 }
 0x103   :  { %v246_v8 = vpop.xlane.xlu1 %245  ;;  %v739_v23 = vsel %vm702_vm6, %v623_v16, %v738_v6  ;;  %v667_v16 = vrot.slane %v1342_v54, %v1225_v10  ;;  %v45_v54 = vld [vmem:[#allocation2 + $0x18] sm:$0xff] }
 0x104   :  { %v1358_v12 = vpop.xlane.xlu0 %353  ;;  %v784_v14 = vld [vmem:[#allocation2 + $0x8] sm:$0xff]  ;;  %v527_v45 = vrot.slane %v246_v8, %v1225_v10 }
 0x105   :  { %v792_v17 = vmul.f32 0.00390625, %v784_v14  ;;  %v671_v19 = vrot.slane %v1358_v12, %v1225_v10 }
 0x106   :  { %v718_v47 = vsel %vm702_vm6, %v527_v45, %v717_v25 }
 0x107   :  { %v321_v52 = vpop.xlane.xlu1 %320  ;;  %800 = vxpose.xlu0.b32.cont [2/4] (short) (narrow) %v792_v17, 8  ;;  %v722_v17 = vsel %vm696_vm3, %v547_v3, %v721_v57 }
 0x108   :  { %v627_v26 = vrot.slane %v321_v52, %v1225_v10  ;;  %v264_v9 = vpop.xlane.xlu0 %263 }
 0x109   :  { %v551_v62 = vrot.slane %v264_v9, %v1225_v10 }
 0x10a   :  { %v740_v27 = vsel %vm704_vm7, %v627_v26, %v739_v23  ;;  %v663_v26 = vrot.slane %v1329_v42, %v1225_v10 }
 0x10b   :  { %v768_v28 = vadd.f32 %v740_v27, %v47_v22  ;;  %v1373_v24 = vpop.xlane.xlu1 %356  ;;  %v723_v52 = vsel %vm698_vm4, %v551_v62, %v722_v17 }
 0x10c   :  { %v339_v32 = vpop.xlane.xlu0 %338  ;;  %v675_v9 = vrot.slane %v1373_v24, %v1225_v10  ;;  %v748_v29 = vsel %vm692_vm1, %v667_v16, %v663_v26 }
 0x10d   :  { %777 = vst.msk [vmem:[#allocation2 + $0x28] sm:$0xff] %vm33_vm0, %v768_v28  ;;  %v651_v51 = vrot.slane %v339_v32, %v1225_v10  ;;  %v749_v33 = vsel %vm694_vm2, %v671_v19, %v748_v29 }
 0x10e   :  { %v750_v35 = vsel %vm696_vm3, %v675_v9, %v749_v33 }
 0x10f   :  { %v267_v36 = vpop.xlane.xlu1 %266  ;;  %v745_v18 = vsel %vm700_vm5, %v651_v51, %v744_v5 }
 0x110   :  { %v249_v41 = vpop.xlane.xlu0 %248  ;;  %v555_v2 = vrot.slane %v267_v36, %v1225_v10 }
 0x111   :  { %v531_v46 = vrot.slane %v249_v41, %v1225_v10 }
 0x112   :  { %v724_v23 = vsel %vm700_vm5, %v555_v2, %v723_v52 }
 0x113   :  { %v719_v50 = vsel %vm704_vm7, %v531_v46, %v718_v47  ;;  %v360_v48 = vpop.xlane.xlu1 %359 }
 0x114   :  { %v765_v53 = vadd.f32 %v719_v50, %v44_v37  ;;  %v342_v44 = vpop.xlane.xlu0 %341  ;;  %v788_v55 = vld [vmem:[#allocation2 + $0x28] sm:$0xff]  ;;  %v679_v4 = vrot.slane %v360_v48, %v1225_v10 }
 0x115   :  { %v655_v58 = vrot.slane %v342_v44, %v1225_v10  ;;  %v796_v59 = vmul.f32 0.00390625, %v788_v55 }
 0x116   :  { %774 = vst.msk [vmem:[#allocation2 + $0x10] sm:$0xff] %vm33_vm0, %v765_v53  ;;  %v751_v39 = vsel %vm698_vm4, %v679_v4, %v750_v35 }
 0x117   :  { %v345_v63 = vpop.xlane.xlu1 %344  ;;  %832 = vxpose.xlu1.b32.cont [2/4] (short) (narrow) %v796_v59, 8  ;;  %v746_v14 = vsel %vm702_vm6, %v655_v58, %v745_v18 }
 0x118   :  { %v659_v8 = vrot.slane %v345_v63, %v1225_v10  ;;  %v270_v11 = vpop.xlane.xlu0 %269 }
 0x119   :  { %v559_v15 = vrot.slane %v270_v11, %v1225_v10 }
 0x11a   :  { %v747_v38 = vsel %vm704_vm7, %v659_v8, %v746_v14 }
 0x11b   :  { %v769_v6 = vadd.f32 %v747_v38, %v48_v7  ;;  %v273_v22 = vpop.xlane.xlu1 %272  ;;  %v725_v12 = vsel %vm702_vm6, %v559_v15, %v724_v23 }
 0x11c   :  { %v563_v30 = vrot.slane %v273_v22, %v1225_v10  ;;  %v363_v27 = vpop.xlane.xlu0 %362 }
 0x11d   :  { %778 = vst.msk [vmem:[#allocation2 + $0x30] sm:$0xff] %vm33_vm0, %v769_v6  ;;  %v785_v28 = vld [vmem:[#allocation2 + $0x10] sm:$0xff]  ;;  %v683_v32 = vrot.slane %v363_v27, %v1225_v10 }
 0x11e   :  { %v726_v42 = vsel %vm704_vm7, %v563_v30, %v725_v12  ;;  %v793_v24 = vmul.f32 0.00390625, %v785_v28 }
 0x11f   :  { %v766_v34 = vadd.f32 %v726_v42, %v45_v54  ;;  %v369_v45 = vpop.xlane.xlu1 %368  ;;  %v752_v21 = vsel %vm700_vm5, %v683_v32, %v751_v39 }
 0x120   :  { %v366_v1 = vpop.xlane.xlu0 %365  ;;  %801 = vxpose.xlu0.b32.cont [3/4] (short) (narrow) %v793_v24, 8  ;;  %v691_v36 = vrot.slane %v369_v45, %v1225_v10 }
 0x121   :  { %775 = vst.msk [vmem:[#allocation2 + $0x18] sm:$0xff] %vm33_vm0, %v766_v34  ;;  %v687_v41 = vrot.slane %v366_v1, %v1225_v10 }
 0x123   :  { %v753_v25 = vsel %vm702_vm6, %v687_v41, %v752_v21 }
 0x124   :  { %v754_v37 = vsel %vm704_vm7, %v691_v36, %v753_v25  ;;  %v789_v46 = vld [vmem:[#allocation2 + $0x30] sm:$0xff] }
 0x125   :  { %v770_v61 = vadd.f32 %v754_v37, %v49_v43  ;;  %v797_v47 = vmul.f32 0.00390625, %v789_v46 }
 0x127   :  { %779 = vst.msk [vmem:[#allocation2 + $0x38] sm:$0xff] %vm33_vm0, %v770_v61  ;;  %833 = vxpose.xlu1.b32.cont [3/4] (short) (narrow) %v797_v47, 8 }
 0x128   :  { %v786_v31 = vld [vmem:[#allocation2 + $0x18] sm:$0xff] }
 0x129   :  { %v794_v40 = vmul.f32 0.00390625, %v786_v31 }
 0x12b   :  { %802 = vxpose.xlu0.b32.end [4/4] (short) (narrow) %v794_v40, 8 }
 0x12e   :  { %v790_v50 = vld [vmem:[#allocation2 + $0x38] sm:$0xff] }
 0x12f   :  { %v798_v48 = vmul.f32 0.00390625, %v790_v50 }
 0x131   :  { %834 = vxpose.xlu1.b32.end [4/4] (short) (narrow) %v798_v48, 8 }
 0x19f   :  { %v815_v10 = vpop.trf.xlu0 }
 0x1a0   :  { %1095 = vmatprep.mubr.msk.f32.mxu0 %vm867_vm8, %v815_v10 }
 0x1a5   :  { %v847_v13 = vpop.trf.xlu1 }
 0x1a6   :  { %1096 = vmatmul.mubr.msk.f32.vlgmr.msra.gmra.mrb[0].mxu0 %vm867_vm8, %v847_v13 }
 0x279   :  { %v1097_v51 = vpop.f32.mrb[0].mxu0 }
 0x27a   :  { %v940_v53 = vpop.f32.mrb[1].mxu0  ;;  %v950_v55 = vmax.f32 %v1097_v51, 0.0 }
 0x27b   :  { %v949_v44 = vmax.f32 %v940_v53, 0.0 }
 0x27d   :  { %1100 = vmatprep.mubr.msk.f32.mxu1 %vm952_vm10, %v949_v44 }
 0x27e   :  { %1101 = vmatmul.mubr.msk.f32.vlgmr.msra.gmra.mrb[0].mxu1 %vm952_vm10, %v950_v55 }
 0x351   :  { %v1102_v20 = vpop.f32.mrb[0].mxu1 }
 0x352   :  { %v1077_v56 = vmul.f32 -2.0, %v1102_v20  ;;  %v1029_v58 = vpop.f32.mrb[1].mxu1 }
 0x353   :  { %v1076_v59 = vmul.f32 -2.0, %v1029_v58 }
 0x354   :  { %v1044_v60 = vmul.f32 1.442695, %v1077_v56 }
 0x355   :  { %v1042_v3 = vmul.f32 1.442695, %v1076_v59 }
 0x356   :  { %1118 = vpow2.f32 %v1044_v60 }
 0x357   :  { %1120 = vpow2.f32 %v1042_v3 }
 0x360   :  { %v1119_v5 = vpop.eup %1118 }
 0x361   :  { %v1121_v62 = vpop.eup %1120  ;;  %v1047_v63 = vadd.f32 1.0, %v1119_v5 }
 0x362   :  { %v1046_v0 = vadd.f32 1.0, %v1121_v62 }
 0x363   :  { %1122 = vrcp.f32 %v1047_v63 }
 0x364   :  { %1124 = vrcp.f32 %v1046_v0 }
 0x36d   :  { %v1123_v18 = vpop.eup %1122 }
 0x36e   :  { %v1125_v2 = vpop.eup %1124  ;;  %1053 = vst.msk [vmem:[#allocation6 + $0x8] sm:$0xff] %vm867_vm8, %v1123_v18 }
 0x36f   :  { %1052 = vst.msk [vmem:[#allocation6] sm:$0xff] %vm867_vm8, %v1125_v2 }
 0x370   :  { %1159 = shalt.err (!%p1156_p12)
}
 0x371   :  { %s1160_s11 = scalar_lea.hbm %s1472_s3, 256 }
 0x372   :  { %p1161_p13 = scmp.ne.s32.totalorder %s1472_s3, %s1160_s11  ;;  %p1164_p0 = scmp.lt.u32.totalorder %s1160_s11, %s1472_s3 }
 0x374   :  { %p1166_p1 = pnand %p1164_p0, %p1161_p13 }
 0x376   :  { %1169 = shalt.err (!%p1166_p1)
}
 0x377   :  { %s1179_s16 = smov 128   ;;  %s1180_s17 = smov 8  }
 0x378   :  { %1065 = dma.vmem_to_hbm [thread:$0]  %s1060_s7, 256, %s1472_s3, [#allocation5], %s1179_s16, %s1179_s16, %s1180_s17  }
 0x379   :  { %1172 = dma.done.wait [#allocation5], 256  }
 0x37a   :  { %1173 = vsyncadd [#allocation5], 4294967040 }
 0x37b   :  { %1069 = vsyncpa [#allocation4], 1 }
 0x37c   :  { %1070 = vsyncpa [#allocation5], 1 }

</bundles_post_ra>
